<compile_context>
chip_gen: v5e
topology: v5e:2x2
jax: 0.10.0
libtpu: 0.0.40
codegen_flags: <defaults>
</compile_context>

<pallas_src>
import functools

import jax
import jax.numpy as jnp
from jax.experimental import pallas as pl
from jax.experimental.pallas import tpu as pltpu


def _round_up(x, m):
    return (x + m - 1) // m * m


def _classifier_kernel(q_ref, v_ref, wq_ref, wv_ref, w1_ref, w2_ref, b_ref,
                       out_ref, *, h0p, h1p):
    cdt = wq_ref.dtype  # compute dtype for MXU inputs (bf16 by default)

    # q_net / v_net: Linear (+ folded weight_norm) with f32 accumulation.
    q_pre = jnp.dot(q_ref[...].astype(cdt), wq_ref[...],
                    preferred_element_type=jnp.float32)
    v_pre = jnp.dot(v_ref[...].astype(cdt), wv_ref[...],
                    preferred_element_type=jnp.float32)
    q_h = jnp.maximum(q_pre + b_ref[:, 0:h0p], 0.0)          # ReLU, f32
    v_h = jnp.maximum(v_pre + b_ref[:, h0p:2 * h0p], 0.0)     # ReLU, f32

    # joint = q_h * v_h (f32 elementwise; padded lanes stay exactly zero).
    joint = q_h * v_h

    # main[0..1]: Linear + ReLU  (Dropout p=0 is identity).
    h1 = jnp.dot(joint.astype(cdt), w1_ref[...],
                 preferred_element_type=jnp.float32)
    h1 = jnp.maximum(h1 + b_ref[:, 2 * h0p:2 * h0p + h1p], 0.0)

    # main[3]: final Linear, lane-dense (128-padded) output store.
    logits = jnp.dot(h1.astype(cdt), w2_ref[...],
                     preferred_element_type=jnp.float32)
    out_ref[...] = (logits + b_ref[:, 2 * h0p + h1p:]).astype(out_ref.dtype)


def pack_params(params, in_dim, *, compute_dtype=jnp.bfloat16):
    """Build padded kernel operands from logical params (do this once).

    params: ((wq, bq), (wv, bv), (w1, b1), (w2, b2)) with weights already
    weight-normed and transposed to [in, out] layout; biases are [out].
    """
    (wq, bq), (wv, bv), (w1, b1), (w2, b2) = params
    in_q, in_v = in_dim
    h0 = wq.shape[1]
    h1 = w1.shape[1]
    out = w2.shape[1]

    h0p = _round_up(h0, 128)
    h1p = _round_up(h1, 128)
    outp = _round_up(out, 128)

    wq_p = jnp.zeros((in_q, h0p), jnp.float32).at[:, :h0].set(wq)
    wv_p = jnp.zeros((in_v, h0p), jnp.float32).at[:, :h0].set(wv)
    w1_p = jnp.zeros((h0p, h1p), jnp.float32).at[:h0, :h1].set(w1)
    w2_p = jnp.zeros((h1p, outp), jnp.float32).at[:h1, :out].set(w2)

    # Single packed f32 bias operand: [bq(128) | bv(128) | b1(128) | b2(128)].
    bias = jnp.zeros((1, 2 * h0p + h1p + outp), jnp.float32)
    bias = bias.at[0, :h0].set(bq)
    bias = bias.at[0, h0p:h0p + h0].set(bv)
    bias = bias.at[0, 2 * h0p:2 * h0p + h1].set(b1)
    bias = bias.at[0, 2 * h0p + h1p:2 * h0p + h1p + out].set(b2)

    packed = (wq_p.astype(compute_dtype), wv_p.astype(compute_dtype),
              w1_p.astype(compute_dtype), w2_p.astype(compute_dtype), bias)
    dims = dict(in_q=in_q, in_v=in_v, h0p=h0p, h1p=h1p, outp=outp, out=out)
    return packed, dims


def simple_classifier(q_emb, v_emb, packed, dims, *, block_b=1024,
                      out_dtype=jnp.float32):
    """Classifier head: batch-gridded, lane-dense, weights VMEM-resident.

    For best performance pass q_emb / v_emb already in bf16 (the kernel casts
    activations to the packed-weight dtype before each MXU dot regardless).
    """
    wq_p, wv_p, w1_p, w2_p, bias = packed
    in_q, in_v = dims["in_q"], dims["in_v"]
    h0p, h1p, outp, out = dims["h0p"], dims["h1p"], dims["outp"], dims["out"]

    B = q_emb.shape[0]
    row_align = 16                      # bf16 sublane packing (also fine for f32)
    bp = _round_up(B, row_align)
    if bp >= 4 * row_align:
        # >=2 grid steps on sizable batches so v7x's two TensorCores both work.
        tb = min(block_b, _round_up(pl.cdiv(bp, 2), row_align))
    else:
        tb = bp
    bp = _round_up(bp, tb)
    grid_b = bp // tb

    q = q_emb
    v = v_emb
    if bp != B:
        # Row-only pad (no lane concat/pad); padded rows are sliced off below.
        q = jnp.pad(q, ((0, bp - B), (0, 0)))
        v = jnp.pad(v, ((0, bp - B), (0, 0)))

    btot = 2 * h0p + h1p + outp
    kernel = functools.partial(_classifier_kernel, h0p=h0p, h1p=h1p)

    flops = 2 * bp * ((in_q + in_v) * h0p + h0p * h1p + h1p * outp)
    bytes_accessed = (
        bp * in_q * q.dtype.itemsize + bp * in_v * v.dtype.itemsize
        + bp * outp * jnp.dtype(out_dtype).itemsize
        + wq_p.size * wq_p.dtype.itemsize + wv_p.size * wv_p.dtype.itemsize
        + w1_p.size * w1_p.dtype.itemsize + w2_p.size * w2_p.dtype.itemsize
        + bias.size * bias.dtype.itemsize)

    out_padded = pl.pallas_call(
        kernel,
        out_shape=jax.ShapeDtypeStruct((bp, outp), out_dtype),
        grid_spec=pltpu.PrefetchScalarGridSpec(
            num_scalar_prefetch=0,
            grid=(grid_b,),
            in_specs=[
                pl.BlockSpec((tb, in_q), lambda i: (i, 0)),     # q activations (tiled)
                pl.BlockSpec((tb, in_v), lambda i: (i, 0)),     # v activations (tiled)
                pl.BlockSpec((in_q, h0p), lambda i: (0, 0)),    # Wq (resident)
                pl.BlockSpec((in_v, h0p), lambda i: (0, 0)),    # Wv (resident)
                pl.BlockSpec((h0p, h1p), lambda i: (0, 0)),     # W1 (resident)
                pl.BlockSpec((h1p, outp), lambda i: (0, 0)),    # W2 (resident)
                pl.BlockSpec((1, btot), lambda i: (0, 0)),      # packed biases (resident)
            ],
            out_specs=pl.BlockSpec((tb, outp), lambda i: (i, 0)),
        ),
        compiler_params=pltpu.CompilerParams(
            dimension_semantics=("parallel",),
        ),
        cost_estimate=pl.CostEstimate(flops=flops, transcendentals=0,
                                      bytes_accessed=bytes_accessed),
    )(q, v, wq_p, wv_p, w1_p, w2_p, bias)

    # Kept for exact module semantics; downstream code that accepts the padded
    # (bp, 128) slab can use out_padded directly and skip this copy.
    return out_padded[:B, :out]


def _weight_norm_effective(v, g):
    """weight_norm with dim=None: W_eff = g * v / ||v||_F (g is a scalar)."""
    return g * v / jnp.sqrt(jnp.sum(v * v))


def init_params(key, in_dim, hid_dim, out_dim):
    """Synthetic parameters matching the PyTorch module.

    PyTorch Linear weight is [out, in]; we pre-transpose to [in, out] for the
    x @ W convention. Biases are [out].
    """
    k = jax.random.split(key, 8)
    in_q, in_v = in_dim
    hid0, hid1 = hid_dim

    def lin(kw, kb, d_in, d_out):
        bound = 1.0 / jnp.sqrt(d_in)
        w = jax.random.uniform(kw, (d_out, d_in), jnp.float32, -bound, bound)
        b = jax.random.uniform(kb, (d_out,), jnp.float32, -bound, bound)
        return w, b

    # q_net / v_net: weight_norm(dim=None); at init g = ||V||_F so W_eff == V,
    # but we materialize the normalization explicitly to mirror the semantics.
    vq, bq = lin(k[0], k[1], in_q, hid0)
    wq_eff = _weight_norm_effective(vq, jnp.sqrt(jnp.sum(vq * vq)))

    vv, bv = lin(k[2], k[3], in_v, hid0)
    wv_eff = _weight_norm_effective(vv, jnp.sqrt(jnp.sum(vv * vv)))

    w1, b1 = lin(k[4], k[5], hid0, hid1)
    w2, b2 = lin(k[6], k[7], hid1, out_dim)

    def pack(w, b):
        return w.T.astype(jnp.float32), b.astype(jnp.float32)

    return (pack(wq_eff, bq), pack(wv_eff, bv), pack(w1, b1), pack(w2, b2))


def reference_forward(q_emb, v_emb, params):
    """Pure-JAX reference of the PyTorch forward."""
    (wq, bq), (wv, bv), (w1, b1), (w2, b2) = params
    q_h = jnp.maximum(q_emb @ wq + bq, 0.0)
    v_h = jnp.maximum(v_emb @ wv + bv, 0.0)
    joint = q_h * v_h
    h1 = jnp.maximum(joint @ w1 + b1, 0.0)
    return h1 @ w2 + b2


if __name__ == "__main__":
    # SimpleClassifier(in_dim=(32, 48), hid_dim=(64, 96), out_dim=16)
    in_dim = (32, 48)
    hid_dim = (64, 96)
    out_dim = 16

    key = jax.random.PRNGKey(0)
    k_q, k_v, k_p, k_q2, k_v2 = jax.random.split(key, 5)
    params = init_params(k_p, in_dim, hid_dim, out_dim)

    # --- f32 compute path: exact check against the pure-JAX reference. ---
    packed_f32, dims = pack_params(params, in_dim, compute_dtype=jnp.float32)
    batch = 8
    q_emb = jax.random.normal(k_q, (batch, in_dim[0]), jnp.float32)
    v_emb = jax.random.normal(k_v, (batch, in_dim[1]), jnp.float32)
    logits = jax.block_until_ready(simple_classifier(q_emb, v_emb, packed_f32, dims))
    ref = reference_forward(q_emb, v_emb, params)
    assert logits.shape == (batch, out_dim)
    assert jnp.allclose(logits, ref, atol=1e-4, rtol=1e-4), "mismatch vs reference (f32, B=8)"

    # --- bf16 compute path (default deployment config): multi-step batch grid. ---
    packed_bf16, dims_bf = pack_params(params, in_dim)  # bf16 default
    batch2 = 300
    q2 = jax.random.normal(k_q2, (batch2, in_dim[0]), jnp.float32)
    v2 = jax.random.normal(k_v2, (batch2, in_dim[1]), jnp.float32)
    logits2 = jax.block_until_ready(
        simple_classifier(q2.astype(jnp.bfloat16), v2.astype(jnp.bfloat16),
                          packed_bf16, dims_bf, block_b=128))
    ref2 = reference_forward(q2, v2, params)
    assert logits2.shape == (batch2, out_dim)
    err = jnp.max(jnp.abs(logits2 - ref2))
    scale = jnp.max(jnp.abs(ref2))
    assert err <= 0.05 * scale + 0.02, f"bf16 mismatch vs reference: {err} (scale {scale})"

    print("KERNEL_OK")
</pallas_src>

<mosaic_0001>
module attributes {stable_mosaic.version = 11 : i64} {
  func.func @_classifier_kernel(%arg0: i32, %arg1: memref<16x32xf32, #tpu.memory_space<vmem>>, %arg2: memref<16x48xf32, #tpu.memory_space<vmem>>, %arg3: memref<32x128xf32, #tpu.memory_space<vmem>>, %arg4: memref<48x128xf32, #tpu.memory_space<vmem>>, %arg5: memref<128x128xf32, #tpu.memory_space<vmem>>, %arg6: memref<128x128xf32, #tpu.memory_space<vmem>>, %arg7: memref<1x512xf32, #tpu.memory_space<vmem>>, %arg8: memref<16x128xf32, #tpu.memory_space<vmem>>) attributes {dimension_semantics = [#tpu.dimension_semantics<parallel>], iteration_bounds = array<i64: 1>, scalar_prefetch = 0 : i64, scratch_operands = 0 : i64, tpu.core_type = #tpu.core_type<tc>, window_params = [{transform_indices = @transform_0, window_bounds = array<i64: 16, 32>}, {transform_indices = @transform_1, window_bounds = array<i64: 16, 48>}, {pipeline_mode = #tpu.pipeline_mode<synchronous>, transform_indices = @transform_2, window_bounds = array<i64: 32, 128>}, {pipeline_mode = #tpu.pipeline_mode<synchronous>, transform_indices = @transform_3, window_bounds = array<i64: 48, 128>}, {pipeline_mode = #tpu.pipeline_mode<synchronous>, transform_indices = @transform_4, window_bounds = array<i64: 128, 128>}, {pipeline_mode = #tpu.pipeline_mode<synchronous>, transform_indices = @transform_5, window_bounds = array<i64: 128, 128>}, {pipeline_mode = #tpu.pipeline_mode<synchronous>, transform_indices = @transform_6, window_bounds = array<i64: 1, 512>}, {transform_indices = @transform_7, window_bounds = array<i64: 16, 128>}]} {
    %c0 = arith.constant 0 : index
    %c0_0 = arith.constant 0 : index
    %0 = vector.load %arg1[%c0, %c0_0] : memref<16x32xf32, #tpu.memory_space<vmem>>, vector<16x32xf32>
    %c0_1 = arith.constant 0 : index
    %c0_2 = arith.constant 0 : index
    %1 = vector.load %arg3[%c0_1, %c0_2] : memref<32x128xf32, #tpu.memory_space<vmem>>, vector<32x128xf32>
    %cst = arith.constant dense<0.000000e+00> : vector<16x128xf32>
    %2 = tpu.matmul %0, %1, %cst {dimension_numbers = #tpu.dot_dimension_numbers<[1], [0], [0], [1], [0, 0, 1, 1], [], []>} : vector<16x32xf32>, vector<32x128xf32>, vector<16x128xf32> -> vector<16x128xf32>
    %c0_3 = arith.constant 0 : index
    %c0_4 = arith.constant 0 : index
    %3 = vector.load %arg2[%c0_3, %c0_4] : memref<16x48xf32, #tpu.memory_space<vmem>>, vector<16x48xf32>
    %c0_5 = arith.constant 0 : index
    %c0_6 = arith.constant 0 : index
    %4 = vector.load %arg4[%c0_5, %c0_6] : memref<48x128xf32, #tpu.memory_space<vmem>>, vector<48x128xf32>
    %cst_7 = arith.constant dense<0.000000e+00> : vector<16x128xf32>
    %5 = tpu.matmul %3, %4, %cst_7 {dimension_numbers = #tpu.dot_dimension_numbers<[1], [0], [0], [1], [0, 0, 1, 1], [], []>} : vector<16x48xf32>, vector<48x128xf32>, vector<16x128xf32> -> vector<16x128xf32>
    %c0_8 = arith.constant 0 : index
    %c0_9 = arith.constant 0 : index
    %6 = vector.load %arg7[%c0_8, %c0_9] : memref<1x512xf32, #tpu.memory_space<vmem>>, vector<1x128xf32>
    %7 = vector.broadcast %6 : vector<1x128xf32> to vector<16x128xf32>
    %8 = arith.addf %2, %7 : vector<16x128xf32>
    %cst_10 = arith.constant 0.000000e+00 : f32
    %9 = vector.broadcast %cst_10 : f32 to vector<16x128xf32>
    %10 = arith.maximumf %8, %9 : vector<16x128xf32>
    %c0_11 = arith.constant 0 : index
    %c128 = arith.constant 128 : index
    %11 = vector.load %arg7[%c0_11, %c128] : memref<1x512xf32, #tpu.memory_space<vmem>>, vector<1x128xf32>
    %12 = vector.broadcast %11 : vector<1x128xf32> to vector<16x128xf32>
    %13 = arith.addf %5, %12 : vector<16x128xf32>
    %cst_12 = arith.constant 0.000000e+00 : f32
    %14 = vector.broadcast %cst_12 : f32 to vector<16x128xf32>
    %15 = arith.maximumf %13, %14 : vector<16x128xf32>
    %16 = arith.mulf %10, %15 : vector<16x128xf32>
    %c0_13 = arith.constant 0 : index
    %c0_14 = arith.constant 0 : index
    %17 = vector.load %arg5[%c0_13, %c0_14] : memref<128x128xf32, #tpu.memory_space<vmem>>, vector<128x128xf32>
    %cst_15 = arith.constant dense<0.000000e+00> : vector<16x128xf32>
    %18 = tpu.matmul %16, %17, %cst_15 {dimension_numbers = #tpu.dot_dimension_numbers<[1], [0], [0], [1], [0, 0, 1, 1], [], []>} : vector<16x128xf32>, vector<128x128xf32>, vector<16x128xf32> -> vector<16x128xf32>
    %c0_16 = arith.constant 0 : index
    %c256 = arith.constant 256 : index
    %19 = vector.load %arg7[%c0_16, %c256] : memref<1x512xf32, #tpu.memory_space<vmem>>, vector<1x128xf32>
    %20 = vector.broadcast %19 : vector<1x128xf32> to vector<16x128xf32>
    %21 = arith.addf %18, %20 : vector<16x128xf32>
    %cst_17 = arith.constant 0.000000e+00 : f32
    %22 = vector.broadcast %cst_17 : f32 to vector<16x128xf32>
    %23 = arith.maximumf %21, %22 : vector<16x128xf32>
    %c0_18 = arith.constant 0 : index
    %c0_19 = arith.constant 0 : index
    %24 = vector.load %arg6[%c0_18, %c0_19] : memref<128x128xf32, #tpu.memory_space<vmem>>, vector<128x128xf32>
    %cst_20 = arith.constant dense<0.000000e+00> : vector<16x128xf32>
    %25 = tpu.matmul %23, %24, %cst_20 {dimension_numbers = #tpu.dot_dimension_numbers<[1], [0], [0], [1], [0, 0, 1, 1], [], []>} : vector<16x128xf32>, vector<128x128xf32>, vector<16x128xf32> -> vector<16x128xf32>
    %c0_21 = arith.constant 0 : index
    %c384 = arith.constant 384 : index
    %26 = vector.load %arg7[%c0_21, %c384] : memref<1x512xf32, #tpu.memory_space<vmem>>, vector<1x128xf32>
    %27 = vector.broadcast %26 : vector<1x128xf32> to vector<16x128xf32>
    %28 = arith.addf %25, %27 : vector<16x128xf32>
    %c0_22 = arith.constant 0 : index
    %c0_23 = arith.constant 0 : index
    %29 = vector.load %arg8[%c0_22, %c0_23] : memref<16x128xf32, #tpu.memory_space<vmem>>, vector<16x128xf32>
    tpu.vector_store %arg8[%c0_22, %c0_23], %28 {strides = array<i32>} : memref<16x128xf32, #tpu.memory_space<vmem>>, vector<16x128xf32>,
    return
  }
  func.func @transform_0(%arg0: i32) -> (i32, i32) {
    %c0_i32 = arith.constant 0 : i32
    %c0_i32_0 = arith.constant 0 : i32
    return %arg0, %c0_i32 : i32, i32
  }
  func.func @transform_1(%arg0: i32) -> (i32, i32) {
    %c0_i32 = arith.constant 0 : i32
    %c0_i32_0 = arith.constant 0 : i32
    return %arg0, %c0_i32 : i32, i32
  }
  func.func @transform_2(%arg0: i32) -> (i32, i32) {
    %c0_i32 = arith.constant 0 : i32
    %c0_i32_0 = arith.constant 0 : i32
    %c0_i32_1 = arith.constant 0 : i32
    return %c0_i32, %c0_i32_0 : i32, i32
  }
  func.func @transform_3(%arg0: i32) -> (i32, i32) {
    %c0_i32 = arith.constant 0 : i32
    %c0_i32_0 = arith.constant 0 : i32
    %c0_i32_1 = arith.constant 0 : i32
    return %c0_i32, %c0_i32_0 : i32, i32
  }
  func.func @transform_4(%arg0: i32) -> (i32, i32) {
    %c0_i32 = arith.constant 0 : i32
    %c0_i32_0 = arith.constant 0 : i32
    %c0_i32_1 = arith.constant 0 : i32
    return %c0_i32, %c0_i32_0 : i32, i32
  }
  func.func @transform_5(%arg0: i32) -> (i32, i32) {
    %c0_i32 = arith.constant 0 : i32
    %c0_i32_0 = arith.constant 0 : i32
    %c0_i32_1 = arith.constant 0 : i32
    return %c0_i32, %c0_i32_0 : i32, i32
  }
  func.func @transform_6(%arg0: i32) -> (i32, i32) {
    %c0_i32 = arith.constant 0 : i32
    %c0_i32_0 = arith.constant 0 : i32
    %c0_i32_1 = arith.constant 0 : i32
    return %c0_i32, %c0_i32_0 : i32, i32
  }
  func.func @transform_7(%arg0: i32) -> (i32, i32) {
    %c0_i32 = arith.constant 0 : i32
    %c0_i32_0 = arith.constant 0 : i32
    return %arg0, %c0_i32 : i32, i32
  }
}

</mosaic_0001>

<bundles_post_ra>
// kernel: tpu_custom_call.1
= control target key start
LH: loop header
LB: loop body
LE: loop exit
PB: predicated region body
PF: predicated region fallthrough
CT: control target
= control target key end

     0   :  { %12 = vsyncpa [#allocation3], 0  ;;  %s623_s0 = inlined_call_operand.hbm [shape: f32[16,32], index: 0, kind: input, shape index: {}]   ;;  %s624_s1 = inlined_call_operand.hbm [shape: f32[16,48], index: 1, kind: input, shape index: {}]   ;;  %s625_s2 = inlined_call_operand.hbm [shape: f32[32,128], index: 2, kind: input, shape index: {}]   ;;  %s626_s3 = inlined_call_operand.hbm [shape: f32[48,128], index: 3, kind: input, shape index: {}]   ;;  %s627_s4 = inlined_call_operand.hbm [shape: f32[128,128], index: 4, kind: input, shape index: {}]   ;;  %s628_s5 = inlined_call_operand.hbm [shape: f32[128,128], index: 5, kind: input, shape index: {}]   ;;  %s629_s6 = inlined_call_operand.vmem [shape: f32[1,512], index: 6, kind: input, shape index: {}]   ;;  %s630_s7 = inlined_call_operand.hbm [shape: f32[16,128], index: 7, kind: output, shape index: {}]  }
   0x1   :  { %13 = vsyncpa [#allocation6], 0 }
   0x2   :  { %14 = vsyncpa [#allocation9], 0 }
   0x3   :  { %15 = vsyncpa [#allocation12], 0 }
   0x4   :  { %16 = vsyncpa [#allocation4], 0  ;;  %s34_s26 = sshll.u32 %s624_s1, 4  ;;  %s516_s27 = smov [#allocation5]   ;;  %s35_s26 = int_to_ptr.hbm [resolvable:$true] %s34_s26 }
   0x5   :  { %s36_s28 = sshll.u32 %s516_s27, 4  ;;  %s60_s8 = sshll.u32 %s626_s3, 4  ;;  %s37_s28 = int_to_ptr.vmem [resolvable:$true] %s36_s28  ;;  %s61_s8 = int_to_ptr.hbm [resolvable:$true] %s60_s8 }
   0x6   :  { %s517_s9 = smov 128   ;;  %s518_s10 = smov 8  }
   0x7   :  { %42 = dma.hbm_to_vmem [thread:$0]  %s35_s26, 256, %s37_s28, [#allocation6], %s517_s9, %s517_s9, %s518_s10  }
   0x8   :  { %s519_s11 = smov [#allocation8]   ;;  %s21_s1 = sshll.u32 %s623_s0, 4  ;;  %s22_s1 = int_to_ptr.hbm [resolvable:$true] %s21_s1 }
   0x9   :  { %s62_s12 = sshll.u32 %s519_s11, 4  ;;  %s47_s16 = sshll.u32 %s625_s2, 4  ;;  %s63_s12 = int_to_ptr.vmem [resolvable:$true] %s62_s12  ;;  %s48_s16 = int_to_ptr.hbm [resolvable:$true] %s47_s16 }
   0xa   :  { %68 = dma.hbm_to_vmem [thread:$0]  %s61_s8, 768, %s63_s12, [#allocation9], %s517_s9, %s517_s9, %s518_s10  }
   0xb   :  { %s520_s17 = smov [#allocation2]   ;;  %s521_s19 = smov [#allocation7]  }
   0xc   :  { %s23_s18 = sshll.u32 %s520_s17, 4  ;;  %s49_s0 = sshll.u32 %s521_s19, 4  ;;  %s24_s18 = int_to_ptr.vmem [resolvable:$true] %s23_s18  ;;  %s50_s0 = int_to_ptr.vmem [resolvable:$true] %s49_s0 }
   0xd   :  { %29 = dma.hbm_to_vmem [thread:$0]  %s22_s1, 256, %s24_s18, [#allocation3], %s517_s9, %s517_s9, %s518_s10  }
   0xe   :  { %s73_s22 = sshll.u32 %s627_s4, 4  ;;  %s86_s24 = sshll.u32 %s628_s5, 4  ;;  %s74_s22 = int_to_ptr.hbm [resolvable:$true] %s73_s22  ;;  %s87_s24 = int_to_ptr.hbm [resolvable:$true] %s86_s24 }
   0xf   :  { %55 = dma.hbm_to_vmem [thread:$0]  %s48_s16, 512, %s50_s0, [#allocation6], %s517_s9, %s517_s9, %s518_s10  }
  0x10   :  { %s522_s25 = smov [#allocation10]   ;;  %s523_s27 = smov [#allocation11]  }
  0x11   :  { %s75_s26 = sshll.u32 %s522_s25, 4  ;;  %s88_s4 = sshll.u32 %s523_s27, 4  ;;  %s76_s26 = int_to_ptr.vmem [resolvable:$true] %s75_s26  ;;  %s89_s4 = int_to_ptr.vmem [resolvable:$true] %s88_s4 }
  0x12   :  { %81 = dma.hbm_to_vmem [thread:$0]  %s74_s22, 2048, %s76_s26, [#allocation9], %s517_s9, %s517_s9, %s518_s10  }
  0x13   :  { %94 = dma.hbm_to_vmem [thread:$0]  %s87_s24, 2048, %s89_s4, [#allocation12], %s517_s9, %s517_s9, %s518_s10  }
  0x14   :  { %506 = dma.done.wait [#allocation3], 256  }
  0x15   :  { %507 = vsyncadd [#allocation3], 4294967040 }
  0x16   :  { %508 = dma.done.wait [#allocation6], 768  }
  0x17   :  { %509 = vsyncadd [#allocation6], 4294966528 }
  0x18   :  { %510 = dma.done.wait [#allocation9], 2816  }
  0x19   :  { %511 = vsyncadd [#allocation9], 4294964480 }
  0x1a   :  { %512 = dma.done.wait [#allocation12], 2048  }
  0x1b   :  { %513 = vsyncadd [#allocation12], 4294965248  ;;  %v134_v0 = vld [vmem:[#allocation8 + $0x28] sm:$0xff]  ;;  %v133_v1 = vld [vmem:[#allocation8 + $0x20] sm:$0xff]  ;;  %vm139_vm0 = vcmask 261120   ;;  %vm175_vm1 = vcmask 392192  }
  0x1c   :  { %v126_v2 = vld [vmem:[#allocation7 + $0x18] sm:$0xff]  ;;  %192 = vmatpush.msra.mxu1 %v134_v0  ;;  %v125_v3 = vld [vmem:[#allocation7 + $0x10] sm:$0xff]  ;;  %v124_v5 = vld [vmem:[#allocation7 + $0x8] sm:$0xff]  ;;  %s524_s14 = smov [#allocation13]   ;;  %s305_s16 = sshll.u32 %s630_s7, 4  ;;  %s306_s16 = int_to_ptr.hbm [resolvable:$true] %s305_s16 }
  0x1d   :  { %158 = vmatpush.msra.mxu0 %v126_v2  ;;  %v132_v4 = vld [vmem:[#allocation8 + $0x18] sm:$0xff]  ;;  %v131_v6 = vld [vmem:[#allocation8 + $0x10] sm:$0xff]  ;;  %v123_v7 = vld [vmem:[#allocation7] sm:$0xff]  ;;  %s303_s1 = sshll.u32 %s524_s14, 4  ;;  %s304_s1 = int_to_ptr.vmem [resolvable:$true] %s303_s1 }
  0x1e   :  { %193 = vmatpush.msra.mxu1 %v133_v1  ;;  %v224_v8 = vld [vmem:[#allocation10 + $0x78] sm:$0xff]  ;;  %v121_v9 = vld [vmem:[#allocation2] sm:$0xff]  ;;  %v222_v12 = vld [vmem:[#allocation10 + $0x68] sm:$0xff] }
  0x1f   :  { %159 = vmatpush.msra.mxu0 %v125_v3  ;;  %v223_v10 = vld [vmem:[#allocation10 + $0x70] sm:$0xff]  ;;  %v130_v11 = vld [vmem:[#allocation8 + $0x8] sm:$0xff]  ;;  %229 = vmatpush.msra.mxu2 %v224_v8  ;;  %v127_v14 = vld [vmem:[#allocation5] sm:$0xff] }
  0x20   :  { %194 = vmatpush.msra.mxu1 %v132_v4  ;;  %v129_v13 = vld [vmem:[#allocation8] sm:$0xff]  ;;  %v221_v15 = vld [vmem:[#allocation10 + $0x60] sm:$0xff]  ;;  %v220_v16 = vld [vmem:[#allocation10 + $0x58] sm:$0xff] }
  0x21   :  { %160 = vmatpush.msra.mxu0 %v124_v5  ;;  %230 = vmatpush.msra.mxu2 %v223_v10  ;;  %v122_v17 = vld [vmem:[#allocation2 + $0x8] sm:$0xff]  ;;  %v219_v18 = vld [vmem:[#allocation10 + $0x50] sm:$0xff]  ;;  %v218_v19 = vld [vmem:[#allocation10 + $0x48] sm:$0xff] }
  0x22   :  { %195 = vmatpush.msra.mxu1 %v131_v6  ;;  %v128_v20 = vld [vmem:[#allocation5 + $0x8] sm:$0xff]  ;;  %v217_v21 = vld [vmem:[#allocation10 + $0x40] sm:$0xff]  ;;  %v216_v22 = vld [vmem:[#allocation10 + $0x38] sm:$0xff] }
  0x23   :  { %161 = vmatpush.msra.mxu0 %v123_v7  ;;  %231 = vmatpush.msra.mxu2 %v222_v12  ;;  %v215_v23 = vld [vmem:[#allocation10 + $0x30] sm:$0xff]  ;;  %v214_v24 = vld [vmem:[#allocation10 + $0x28] sm:$0xff]  ;;  %v213_v25 = vld [vmem:[#allocation10 + $0x20] sm:$0xff] }
  0x24   :  { %321 = vmatmul.msk.f32.vlgmr.msra.gmra.mxu0 %vm139_vm0, %v121_v9  ;;  %196 = vmatpush.msra.mxu1 %v130_v11  ;;  %v212_v26 = vld [vmem:[#allocation10 + $0x18] sm:$0xff]  ;;  %v211_v27 = vld [vmem:[#allocation10 + $0x10] sm:$0xff]  ;;  %v210_v28 = vld [vmem:[#allocation10 + $0x8] sm:$0xff] }
  0x25   :  { %232 = vmatpush.msra.mxu2 %v221_v15  ;;  %v209_v29 = vld [vmem:[#allocation10] sm:$0xff]  ;;  %v269_v30 = vld [vmem:[#allocation11 + $0x78] sm:$0xff]  ;;  %v268_v31 = vld [vmem:[#allocation11 + $0x70] sm:$0xff] }
  0x26   :  { %197 = vmatpush.msra.mxu1 %v129_v13  ;;  %274 = vmatpush.msra.mxu3 %v269_v30  ;;  %v267_v32 = vld [vmem:[#allocation11 + $0x68] sm:$0xff]  ;;  %v266_v33 = vld [vmem:[#allocation11 + $0x60] sm:$0xff]  ;;  %v265_v34 = vld [vmem:[#allocation11 + $0x58] sm:$0xff] }
  0x27   :  { %323 = vmatmul.msk.f32.vlgmr.msra.gmra.mxu1 %vm175_vm1, %v127_v14  ;;  %233 = vmatpush.msra.mxu2 %v220_v16  ;;  %v264_v35 = vld [vmem:[#allocation11 + $0x50] sm:$0xff]  ;;  %v263_v37 = vld [vmem:[#allocation11 + $0x48] sm:$0xff]  ;;  %v262_v38 = vld [vmem:[#allocation11 + $0x40] sm:$0xff] }
  0x28   :  { %275 = vmatpush.msra.mxu3 %v268_v31  ;;  %v334_v36 = vld [vmem:[%s629_s6] ss:$0 sm:$0xff]  ;;  %v335_v41 = vld [vmem:[%s629_s6 + $0x1] ss:$0 sm:$0xff]  ;;  %v261_v42 = vld [vmem:[#allocation11 + $0x38] sm:$0xff] }
  0x29   :  { %234 = vmatpush.msra.mxu2 %v219_v18  ;;  %v260_v43 = vld [vmem:[#allocation11 + $0x30] sm:$0xff]  ;;  %v259_v47 = vld [vmem:[#allocation11 + $0x28] sm:$0xff]  ;;  %v258_v49 = vld [vmem:[#allocation11 + $0x20] sm:$0xff] }
  0x2a   :  { %276 = vmatpush.msra.mxu3 %v267_v32  ;;  %v257_v53 = vld [vmem:[#allocation11 + $0x18] sm:$0xff]  ;;  %v256_v59 = vld [vmem:[#allocation11 + $0x10] sm:$0xff]  ;;  %v255_v60 = vld [vmem:[#allocation11 + $0x8] sm:$0xff] }
  0x2b   :  { %235 = vmatpush.msra.mxu2 %v218_v19  ;;  %v254_v61 = vld [vmem:[#allocation11] sm:$0xff]  ;;  %v336_v62 = vld [vmem:[%s629_s6 + $0x2] ss:$0 sm:$0xff]  ;;  %v337_v5 = vld [vmem:[%s629_s6 + $0x3] ss:$0 sm:$0xff] }
  0x2c   :  { %322 = vmatmul.msk.f32.gmra.mxu0 %vm139_vm0, %v122_v17  ;;  %277 = vmatpush.msra.mxu3 %v266_v33 }
  0x2d   :  { %236 = vmatpush.msra.mxu2 %v217_v21 }
  0x2e   :  { %278 = vmatpush.msra.mxu3 %v265_v34 }
  0x2f   :  { %324 = vmatmul.msk.f32.gmra.mxu1 %vm175_vm1, %v128_v20  ;;  %237 = vmatpush.msra.mxu2 %v216_v22 }
  0x30   :  { %279 = vmatpush.msra.mxu3 %v264_v35 }
  0x31   :  { %238 = vmatpush.msra.mxu2 %v215_v23 }
  0x32   :  { %280 = vmatpush.msra.mxu3 %v263_v37 }
  0x33   :  { %239 = vmatpush.msra.mxu2 %v214_v24 }
  0x34   :  { %281 = vmatpush.msra.mxu3 %v262_v38 }
  0x35   :  { %240 = vmatpush.msra.mxu2 %v213_v25 }
  0x36   :  { %282 = vmatpush.msra.mxu3 %v261_v42 }
  0x37   :  { %241 = vmatpush.msra.mxu2 %v212_v26 }
  0x38   :  { %283 = vmatpush.msra.mxu3 %v260_v43 }
  0x39   :  { %242 = vmatpush.msra.mxu2 %v211_v27 }
  0x3a   :  { %284 = vmatpush.msra.mxu3 %v259_v47 }
  0x3b   :  { %243 = vmatpush.msra.mxu2 %v210_v28 }
  0x3c   :  { %285 = vmatpush.msra.mxu3 %v258_v49 }
  0x3d   :  { %244 = vmatpush.msra.mxu2 %v209_v29 }
  0x3e   :  { %286 = vmatpush.msra.mxu3 %v257_v53 }
  0x40   :  { %287 = vmatpush.msra.mxu3 %v256_v59 }
  0x42   :  { %288 = vmatpush.msra.mxu3 %v255_v60 }
  0x44   :  { %289 = vmatpush.msra.mxu3 %v254_v61 }
  0xa1   :  { %v163_v39 = vpop.f32.mrf.mxu0 }
  0xa2   :  { %v164_v40 = vadd.f32 %v334_v36, %v163_v39 }
  0xa4   :  { %v199_v44 = vpop.f32.mrf.mxu1  ;;  %v169_v45 = vmax.f32 %v164_v40, 0.0 }
  0xa5   :  { %v200_v46 = vadd.f32 %v335_v41, %v199_v44 }
  0xa7   :  { %v205_v48 = vmax.f32 %v200_v46, 0.0 }
  0xa9   :  { %v166_v50 = vpop.f32.mrf.mxu0  ;;  %v207_v51 = vmul.f32 %v205_v48, %v169_v45 }
  0xaa   :  { %v167_v52 = vadd.f32 %v334_v36, %v166_v50 }
  0xab   :  { %245 = vmatmul.f32.vlgmr.msra.gmra.mxu2 %v207_v51 }
  0xac   :  { %v202_v54 = vpop.f32.mrf.mxu1  ;;  %v170_v55 = vmax.f32 %v167_v52, 0.0 }
  0xad   :  { %v203_v56 = vadd.f32 %v335_v41, %v202_v54 }
  0xaf   :  { %v206_v57 = vmax.f32 %v203_v56, 0.0 }
  0xb1   :  { %v208_v58 = vmul.f32 %v206_v57, %v170_v55 }
  0xb3   :  { %248 = vmatmul.f32.gmra.mxu2 %v208_v58 }
 0x12e   :  { %v246_v63 = vpop.f32.mrf.mxu2 }
 0x12f   :  { %v247_v0 = vadd.f32 %v336_v62, %v246_v63 }
 0x131   :  { %v252_v1 = vmax.f32 %v247_v0, 0.0 }
 0x133   :  { %290 = vmatmul.f32.vlgmr.msra.gmra.mxu3 %v252_v1 }
 0x136   :  { %v249_v2 = vpop.f32.mrf.mxu2 }
 0x137   :  { %v250_v3 = vadd.f32 %v336_v62, %v249_v2 }
 0x139   :  { %v253_v4 = vmax.f32 %v250_v3, 0.0 }
 0x13b   :  { %293 = vmatmul.f32.gmra.mxu3 %v253_v4 }
 0x1b6   :  { %v291_v6 = vpop.f32.mrf.mxu3 }
 0x1b7   :  { %v292_v7 = vadd.f32 %v337_v5, %v291_v6 }
 0x1b9   :  { %297 = vst [vmem:[#allocation13] sm:$0xff] %v292_v7 }
 0x1be   :  { %v294_v8 = vpop.f32.mrf.mxu3 }
 0x1bf   :  { %v295_v9 = vadd.f32 %v337_v5, %v294_v8 }
 0x1c1   :  { %298 = vst [vmem:[#allocation13 + $0x8] sm:$0xff] %v295_v9 }
 0x1c2   :  { %311 = dma.vmem_to_hbm [thread:$0]  %s304_s1, 256, %s306_s16, [#allocation4], %s517_s9, %s517_s9, %s518_s10  }
 0x1c3   :  { %514 = dma.done.wait [#allocation4], 256  }
 0x1c4   :  { %515 = vsyncadd [#allocation4], 4294967040 }
 0x1c5   :  { %316 = vsyncpa [#allocation3], 1 }
 0x1c6   :  { %317 = vsyncpa [#allocation6], 1 }
 0x1c7   :  { %318 = vsyncpa [#allocation9], 1 }
 0x1c8   :  { %319 = vsyncpa [#allocation12], 1 }
 0x1c9   :  { %320 = vsyncpa [#allocation4], 1 }

</bundles_post_ra>
